<compile_context>
chip_gen: v7x
topology: tpu7x:2x2x1
jax: 0.10.0
libtpu: 0.0.40
codegen_flags: <defaults>
</compile_context>

<pallas_src>
import jax
import jax.numpy as jnp
from jax import lax
from jax.experimental import pallas as pl
from jax.experimental.pallas import tpu as pltpu


def _anchornet_kernel(attn_ref, w2_ref, b2_ref, x_ref, out_ref):
    """Per-batch-tile AnchorNet forward.

    attn_ref: (bt, in_dim)        activations (native dtype)
    w2_ref  : (in_dim, 2*out_dim) Linear weight, transposed & column-duplicated
    b2_ref  : (1, 2*out_dim)      Linear bias, duplicated to match
    x_ref   : (bt, 2*out_dim)     anchors, native contiguous (out_dim, 2) flatten
    out_ref : (bt, 2)             output, batch on sublanes
    """
    two_k = x_ref.shape[-1]

    # Linear with anchor-interleaved duplicated columns:
    #   logits2[b, 2o + t] == logits[b, o]  for t in {0, 1}.
    logits2 = jnp.dot(attn_ref[...], w2_ref[...],
                      preferred_element_type=jnp.float32) + b2_ref[...]

    # Numerically stable softmax over the duplicated lanes. Every true class
    # appears exactly twice, so the denominator is 2x the true one -> multiply
    # by 2 to recover the interleaved softmax probabilities exactly.
    m = jnp.max(logits2, axis=-1, keepdims=True)                 # (bt, 1)
    e = jnp.exp(logits2 - m)                                     # (bt, 2K)
    denom = jnp.sum(e, axis=-1, keepdims=True)                   # (bt, 1) == 2*S
    p2 = e * (2.0 / denom)                                       # p2[b,2o+t] = p[b,o]

    # Weighted sum over anchors. Even lanes belong to t=0, odd lanes to t=1;
    # reduce them with a tiny (bt, 2K) @ (2K, 2) selection matmul so the result
    # lands directly in the (bt, 2) output layout (no relayout, no masked
    # lane compaction).
    prod = p2 * x_ref[...].astype(jnp.float32)                   # (bt, 2K)
    l_idx = lax.broadcasted_iota(jnp.int32, (two_k, 2), 0)
    c_idx = lax.broadcasted_iota(jnp.int32, (two_k, 2), 1)
    sel = jnp.where((l_idx % 2) == c_idx, 1.0, 0.0).astype(jnp.float32)
    out_ref[...] = jnp.dot(prod, sel,
                           preferred_element_type=jnp.float32).astype(out_ref.dtype)


def _round_up(n, m):
    return -(-n // m) * m


def _padded_vmem_bytes(shape, dtype):
    """Bytes a block of `shape`/`dtype` actually occupies in VMEM (lane-padded
    to 128, sublane-padded to the dtype's packing multiple)."""
    itemsize = jnp.dtype(dtype).itemsize
    shape = tuple(shape)
    if len(shape) == 1:
        shape = (1,) + shape
    lead = 1
    for d in shape[:-2]:
        lead *= int(d)
    sub_mult = (8 * 4) // itemsize          # f32 -> 8, bf16 -> 16, int8 -> 32
    sub = _round_up(int(shape[-2]), sub_mult)
    lane = _round_up(int(shape[-1]), 128)
    return lead * sub * lane * itemsize


def anchornet_forward(x, attn_out, weight, bias, *, batch_tile=4096, interpret=False):
    """x: (B, out_dim, 2), attn_out: (B, in_dim),
    weight: (out_dim, in_dim) [native PyTorch layout], bias: (out_dim,).
    Returns (B, 2) float32."""
    B, out_dim, two = x.shape
    _, in_dim = attn_out.shape
    assert two == 2
    assert weight.shape == (out_dim, in_dim)
    assert bias.shape == (out_dim,)
    two_k = 2 * out_dim

    # ---- host-side, one-time / free prep ------------------------------------
    # Free metadata-only reshape: x_flat[b, 2o + t] == x[b, o, t]. No HBM pass,
    # no dtype upcast (streamed in native dtype; cast to f32 inside the kernel).
    x_flat = x.reshape(B, two_k)

    # Tiny constant prep (folds away under jit): transpose + interleave-duplicate
    # the Linear's parameters so no per-step RHS handling is needed in-kernel.
    #   w2[:, 2o + t] = weight[o, :],  b2[0, 2o + t] = bias[o]
    w2 = jnp.repeat(weight.astype(jnp.float32).T, 2, axis=1)     # (in_dim, 2K)
    b2 = jnp.repeat(bias.astype(jnp.float32), 2).reshape(1, two_k)

    # ---- batch tiling --------------------------------------------------------
    # Small B: one step (per-step overhead dominates regardless; splitting a tiny
    # batch buys nothing). Large B: big tiles (default 4096 rows) to amortize the
    # ~0.35us fixed per-grid-step cost, but always >= 2 steps so the "parallel"
    # axis can shard across both v7x TensorCores (prefer an even step count).
    if B <= 1024:
        bt = B
    else:
        bt = min(batch_tile, _round_up(pl.cdiv(B, 2), 8))
        bt = _round_up(bt, 8)

    # Padding-aware VMEM accounting against this generation's actual capacity.
    try:
        vmem_cap = int(pltpu.get_tpu_info().vmem_capacity_bytes)
        if vmem_cap <= 0:
            raise ValueError
    except Exception:
        vmem_cap = 64 << 20                 # conservative default: v7x per-core VMEM

    def _tile_vmem_bytes(bt_):
        streamed = (_padded_vmem_bytes((bt_, in_dim), attn_out.dtype)
                    + _padded_vmem_bytes((bt_, two_k), x_flat.dtype)
                    + _padded_vmem_bytes((bt_, 2), jnp.float32))
        params = (_padded_vmem_bytes((in_dim, two_k), jnp.float32)
                  + _padded_vmem_bytes((1, two_k), jnp.float32))
        return 2 * (streamed + params)      # default double-buffered pipeline

    budget = (vmem_cap * 3) // 4            # headroom for Mosaic internal scratch
    while bt > 8 and _tile_vmem_bytes(bt) > budget:
        bt = _round_up(max(bt // 2, 8), 8)

    nb = pl.cdiv(B, bt)
    if nb > 1 and nb % 2 == 1:
        # Best-effort: bump to an even number of steps so both v7x cores get
        # equal work.
        bt_even = _round_up(pl.cdiv(B, nb + 1), 8)
        if bt_even >= 8 and pl.cdiv(B, bt_even) % 2 == 0:
            bt = bt_even
            nb = pl.cdiv(B, bt)

    vmem_limit = int(min(vmem_cap, max(_tile_vmem_bytes(bt) + (4 << 20), 16 << 20)))

    out = pl.pallas_call(
        _anchornet_kernel,
        out_shape=jax.ShapeDtypeStruct((B, 2), jnp.float32),
        grid=(nb,),
        in_specs=[
            pl.BlockSpec((bt, in_dim), lambda i: (i, 0)),
            pl.BlockSpec((in_dim, two_k), lambda i: (0, 0)),
            pl.BlockSpec((1, two_k), lambda i: (0, 0)),
            pl.BlockSpec((bt, two_k), lambda i: (i, 0)),
        ],
        out_specs=pl.BlockSpec((bt, 2), lambda i: (i, 0)),
        compiler_params=pltpu.CompilerParams(
            dimension_semantics=("parallel",),
            vmem_limit_bytes=vmem_limit,
        ),
        interpret=interpret,
    )(attn_out, w2, b2, x_flat)

    return out                                                   # (B, 2)


def anchornet_reference(x, attn_out, weight, bias):
    logits = attn_out.astype(jnp.float32) @ weight.astype(jnp.float32).T \
        + bias.astype(jnp.float32)
    p = jax.nn.softmax(logits, axis=1)
    return jnp.einsum("bo,bot->bt", p, x.astype(jnp.float32))


if __name__ == "__main__":
    B, in_dim, out_dim = 2, 32, 16

    key = jax.random.PRNGKey(0)
    k_x, k_a, k_w, k_b = jax.random.split(key, 4)

    x = jax.random.normal(k_x, (B, out_dim, 2), dtype=jnp.float32)
    attn_out = jax.random.normal(k_a, (B, in_dim), dtype=jnp.float32)

    # Deterministic parameter init (PyTorch-Linear-like uniform bound).
    bound = 1.0 / (in_dim ** 0.5)
    weight = jax.random.uniform(
        k_w, (out_dim, in_dim), dtype=jnp.float32, minval=-bound, maxval=bound
    )
    bias = jax.random.uniform(
        k_b, (out_dim,), dtype=jnp.float32, minval=-bound, maxval=bound
    )

    out = anchornet_forward(x, attn_out, weight, bias)
    jax.block_until_ready(out)

    ref = anchornet_reference(x, attn_out, weight, bias)
    assert out.shape == (B, 2)
    # Exact reciprocal in the softmax denominator -> tight tolerance.
    assert jnp.allclose(out, ref, atol=1e-5, rtol=1e-5), (out, ref)

    print("KERNEL_OK")
</pallas_src>

<mosaic_0001>
module attributes {stable_mosaic.version = 11 : i64} {
  func.func @_anchornet_kernel(%arg0: i32, %arg1: memref<2x32xf32, #tpu.memory_space<vmem>>, %arg2: memref<32x32xf32, #tpu.memory_space<vmem>>, %arg3: memref<1x32xf32, #tpu.memory_space<vmem>>, %arg4: memref<2x32xf32, #tpu.memory_space<vmem>>, %arg5: memref<2x2xf32, #tpu.memory_space<vmem>>) attributes {dimension_semantics = [#tpu.dimension_semantics<parallel>], iteration_bounds = array<i64: 1>, scalar_prefetch = 0 : i64, scratch_operands = 0 : i64, tpu.core_type = #tpu.core_type<tc>, window_params = [{transform_indices = @transform_0, window_bounds = array<i64: 2, 32>}, {pipeline_mode = #tpu.pipeline_mode<synchronous>, transform_indices = @transform_1, window_bounds = array<i64: 32, 32>}, {pipeline_mode = #tpu.pipeline_mode<synchronous>, transform_indices = @transform_2, window_bounds = array<i64: 1, 32>}, {transform_indices = @transform_3, window_bounds = array<i64: 2, 32>}, {transform_indices = @transform_4, window_bounds = array<i64: 2, 2>}]} {
    %c0 = arith.constant 0 : index
    %c0_0 = arith.constant 0 : index
    %0 = vector.load %arg1[%c0, %c0_0] : memref<2x32xf32, #tpu.memory_space<vmem>>, vector<2x32xf32>
    %c0_1 = arith.constant 0 : index
    %c0_2 = arith.constant 0 : index
    %1 = vector.load %arg2[%c0_1, %c0_2] : memref<32x32xf32, #tpu.memory_space<vmem>>, vector<32x32xf32>
    %cst = arith.constant dense<0.000000e+00> : vector<2x32xf32>
    %2 = tpu.matmul %0, %1, %cst {dimension_numbers = #tpu.dot_dimension_numbers<[1], [0], [0], [1], [0, 0, 1, 1], [], []>} : vector<2x32xf32>, vector<32x32xf32>, vector<2x32xf32> -> vector<2x32xf32>
    %c0_3 = arith.constant 0 : index
    %c0_4 = arith.constant 0 : index
    %3 = vector.load %arg3[%c0_3, %c0_4] : memref<1x32xf32, #tpu.memory_space<vmem>>, vector<1x32xf32>
    %4 = vector.broadcast %3 : vector<1x32xf32> to vector<2x32xf32>
    %5 = arith.addf %2, %4 : vector<2x32xf32>
    %cst_5 = arith.constant dense<0xFF800000> : vector<2xf32>
    %6 = vector.multi_reduction <maximumf>, %5, %cst_5 [1] : vector<2x32xf32> to vector<2xf32>
    %7 = vector.shape_cast %6 : vector<2xf32> to vector<2x1xf32>
    %8 = vector.broadcast %7 : vector<2x1xf32> to vector<2x32xf32>
    %9 = arith.subf %5, %8 : vector<2x32xf32>
    %10 = math.exp %9 : vector<2x32xf32>
    %cst_6 = arith.constant dense<0.000000e+00> : vector<2xf32>
    %11 = vector.multi_reduction <add>, %10, %cst_6 [1] : vector<2x32xf32> to vector<2xf32>
    %12 = vector.shape_cast %11 : vector<2xf32> to vector<2x1xf32>
    %cst_7 = arith.constant 2.000000e+00 : f32
    %13 = vector.broadcast %cst_7 : f32 to vector<2x1xf32>
    %14 = arith.divf %13, %12 : vector<2x1xf32>
    %15 = vector.broadcast %14 : vector<2x1xf32> to vector<2x32xf32>
    %16 = arith.mulf %10, %15 : vector<2x32xf32>
    %c0_8 = arith.constant 0 : index
    %c0_9 = arith.constant 0 : index
    %17 = vector.load %arg4[%c0_8, %c0_9] : memref<2x32xf32, #tpu.memory_space<vmem>>, vector<2x32xf32>
    %18 = arith.mulf %16, %17 : vector<2x32xf32>
    %19 = tpu.iota {dimensions = array<i32: 0>} : vector<32x2xi32>
    %20 = tpu.iota {dimensions = array<i32: 1>} : vector<32x2xi32>
    %c2_i32 = arith.constant 2 : i32
    %c0_i32 = arith.constant 0 : i32
    %21 = arith.cmpi eq, %c2_i32, %c0_i32 : i32
    %c1_i32 = arith.constant 1 : i32
    %22 = arith.select %21, %c1_i32, %c2_i32 : i32
    %23 = vector.broadcast %22 : i32 to vector<32x2xi32>
    %24 = arith.remsi %19, %23 : vector<32x2xi32>
    %c0_i32_10 = arith.constant 0 : i32
    %25 = vector.broadcast %c0_i32_10 : i32 to vector<32x2xi32>
    %26 = arith.cmpi ne, %24, %25 : vector<32x2xi32>
    %c0_i32_11 = arith.constant 0 : i32
    %27 = vector.broadcast %c0_i32_11 : i32 to vector<32x2xi32>
    %28 = arith.cmpi slt, %24, %27 : vector<32x2xi32>
    %c0_i32_12 = arith.constant 0 : i32
    %29 = arith.cmpi slt, %22, %c0_i32_12 : i32
    %30 = vector.broadcast %29 : i1 to vector<32x2xi1>
    %31 = vector.broadcast %30 : vector<32x2xi1> to vector<32x2xi1>
    %32 = arith.xori %28, %31 : vector<32x2xi1>
    %33 = arith.andi %32, %26 : vector<32x2xi1>
    %34 = vector.broadcast %22 : i32 to vector<32x2xi32>
    %35 = arith.addi %24, %34 : vector<32x2xi32>
    %36 = arith.select %33, %35, %24 : vector<32x2xi1>, vector<32x2xi32>
    %37 = arith.cmpi eq, %36, %20 : vector<32x2xi32>
    %cst_13 = arith.constant 1.000000e+00 : f32
    %cst_14 = arith.constant 0.000000e+00 : f32
    %38 = vector.broadcast %cst_13 : f32 to vector<32x2xf32>
    %39 = vector.broadcast %cst_14 : f32 to vector<32x2xf32>
    %40 = arith.select %37, %38, %39 : vector<32x2xi1>, vector<32x2xf32>
    %cst_15 = arith.constant dense<0.000000e+00> : vector<2x2xf32>
    %41 = tpu.matmul %18, %40, %cst_15 {dimension_numbers = #tpu.dot_dimension_numbers<[1], [0], [0], [1], [0, 0, 1, 1], [], []>} : vector<2x32xf32>, vector<32x2xf32>, vector<2x2xf32> -> vector<2x2xf32>
    %c0_16 = arith.constant 0 : index
    %c0_17 = arith.constant 0 : index
    %42 = vector.load %arg5[%c0_16, %c0_17] : memref<2x2xf32, #tpu.memory_space<vmem>>, vector<2x2xf32>
    tpu.vector_store %arg5[%c0_16, %c0_17], %41 {strides = array<i32>} : memref<2x2xf32, #tpu.memory_space<vmem>>, vector<2x2xf32>,
    return
  }
  func.func @transform_0(%arg0: i32) -> (i32, i32) {
    %c0_i32 = arith.constant 0 : i32
    %c0_i32_0 = arith.constant 0 : i32
    return %arg0, %c0_i32 : i32, i32
  }
  func.func @transform_1(%arg0: i32) -> (i32, i32) {
    %c0_i32 = arith.constant 0 : i32
    %c0_i32_0 = arith.constant 0 : i32
    %c0_i32_1 = arith.constant 0 : i32
    return %c0_i32, %c0_i32_0 : i32, i32
  }
  func.func @transform_2(%arg0: i32) -> (i32, i32) {
    %c0_i32 = arith.constant 0 : i32
    %c0_i32_0 = arith.constant 0 : i32
    %c0_i32_1 = arith.constant 0 : i32
    return %c0_i32, %c0_i32_0 : i32, i32
  }
  func.func @transform_3(%arg0: i32) -> (i32, i32) {
    %c0_i32 = arith.constant 0 : i32
    %c0_i32_0 = arith.constant 0 : i32
    return %arg0, %c0_i32 : i32, i32
  }
  func.func @transform_4(%arg0: i32) -> (i32, i32) {
    %c0_i32 = arith.constant 0 : i32
    %c0_i32_0 = arith.constant 0 : i32
    return %arg0, %c0_i32 : i32, i32
  }
}

</mosaic_0001>

<bundles_post_ra>
// kernel: tpu_custom_call.1
= control target key start
LH: loop header
LB: loop body
LE: loop exit
PB: predicated region body
PF: predicated region fallthrough
CT: control target
= control target key end

     0   :  { %9 = vsyncpa [#allocation3], 0  ;;  %s520_s0 = inlined_call_operand.hbm [shape: f32[2,32], index: 0, kind: input, shape index: {}]   ;;  %s521_s1 = inlined_call_operand.hbm [shape: f32[32,32], index: 1, kind: input, shape index: {}]   ;;  %s522_s2 = inlined_call_operand.vmem [shape: f32[1,32], index: 2, kind: input, shape index: {}]   ;;  %s523_s3 = inlined_call_operand.vmem [shape: f32[2,32], index: 3, kind: input, shape index: {}]   ;;  %s524_s4 = inlined_call_operand.hbm [shape: f32[2,2], index: 4, kind: output, shape index: {}]  }
   0x1   :  { %10 = vsyncpa [#allocation6], 0 }
   0x2   :  { %11 = vsyncpa [#allocation4], 0  ;;  %s435_s15 = smov [#allocation2]   ;;  %s436_s17 = smov [#allocation5]  }
   0x3   :  { %s18_s16 = sshll.u32 %s435_s15, 4  ;;  %s27_s18 = sshll.u32 %s436_s17, 4  ;;  %s19_s16 = int_to_ptr.vmem [resolvable:$true] %s18_s16  ;;  %s469_s18 = int_to_ptr.vmem [resolvable:$true] %s27_s18 }
   0x4   :  { %s363_s21 = scalar_lea.hbm %s520_s0, 32 }
   0x5   :  { %p364_p0 = scmp.ne.s32.totalorder %s520_s0, %s363_s21  ;;  %p367_p1 = scmp.lt.u32.totalorder %s363_s21, %s520_s0 }
   0x7   :  { %p369_p2 = pnand %p367_p1, %p364_p0 }
   0x9   :  { %372 = shalt.err (!%p369_p2)
}
   0xa   :  { %s373_s26 = scalar_lea.vmem %s19_s16, 32  ;;  %p378_p4 = scmp.lt.s32.totalorder %s19_s16, %s19_s16 }
   0xb   :  { %p374_p3 = scmp.ne.s32.totalorder %s19_s16, %s373_s26  ;;  %p379_p5 = scmp.lt.s32.totalorder %s373_s26, %s373_s26 }
   0xd   :  { %p380_p6 = por %p379_p5, %p378_p4 }
   0xf   :  { %p381_p7 = pnand %p380_p6, %p374_p3 }
  0x11   :  { %384 = shalt.err (!%p381_p7)
}
  0x12   :  { %21 = dma.hbm_to_vmem [thread:$0]  %s520_s0, 32, %s19_s16, [#allocation3]  }
  0x13   :  { %s385_s5 = scalar_lea.hbm %s521_s1, 512 }
  0x14   :  { %p386_p8 = scmp.ne.s32.totalorder %s521_s1, %s385_s5  ;;  %p389_p9 = scmp.lt.u32.totalorder %s385_s5, %s521_s1 }
  0x16   :  { %p391_p10 = pnand %p389_p9, %p386_p8 }
  0x18   :  { %394 = shalt.err (!%p391_p10)
}
  0x19   :  { %s395_s10 = scalar_lea.vmem %s469_s18, 512  ;;  %p400_p12 = scmp.lt.s32.totalorder %s469_s18, %s469_s18 }
  0x1a   :  { %p396_p11 = scmp.ne.s32.totalorder %s469_s18, %s395_s10  ;;  %p401_p13 = scmp.lt.s32.totalorder %s395_s10, %s395_s10 }
  0x1c   :  { %p402_p0 = por %p401_p13, %p400_p12 }
  0x1e   :  { %p403_p1 = pnand %p402_p0, %p396_p11 }
  0x20   :  { %406 = shalt.err (!%p403_p1)
}
  0x21   :  { %s437_s0 = smov 128   ;;  %s438_s11 = smov 8  }
  0x22   :  { %33 = dma.hbm_to_vmem [thread:$0]  %s521_s1, 512, %s469_s18, [#allocation6], %s437_s0, %s437_s0, %s438_s11  }
  0x23   :  { %429 = dma.done.wait [#allocation3], 32  }
  0x24   :  { %430 = vsyncadd [#allocation3], 4294967264 }
  0x25   :  { %431 = dma.done.wait [#allocation6], 512  }
  0x26   :  { %432 = vsyncadd [#allocation6], 4294966784  ;;  %v439_v0 = vmov 0.0|0.0   ;;  %vm440_vm0 = vmmov 0   ;;  %v441_v1 = vmov 0.0   ;;  %v45_v2 = vld [vmem:[#allocation5] sm:$0xff]  ;;  %v145_v19 = vlaneseq }
  0x27   :  { %338 = vmatprep.subr.bf16.mxu0 %v439_v0  ;;  %324 = vmatprep.mubr.msk.f32.mxu0 %vm440_vm0, %v441_v1  ;;  %v46_v3 = vld [vmem:[#allocation5 + $0x8] sm:$0xff]  ;;  %v47_v4 = vld [vmem:[#allocation5 + $0x10] sm:$0xff]  ;;  %v48_v6 = vld [vmem:[#allocation5 + $0x18] sm:$0xff]  ;;  %vm56_vm1 = vcmask 261120   ;;  %vm130_vm2 = vcmask 254976   ;;  %s443_s16 = smov [#allocation7]  }
  0x28   :  { %344 = vmatprep.subr.bf16.mxu1 %v439_v0  ;;  %335 = vmatprep.mubr.msk.f32.mxu1 %vm440_vm0, %v441_v1  ;;  %v339_v5 = vpack.c.bf16 %v46_v3, %v45_v2  ;;  %v342_v7 = vpack.c.bf16 %v48_v6, %v47_v4  ;;  %v44_v8 = vld [vmem:[#allocation2] sm:$0x3]  ;;  %v146_v20 = vshrl.u32 %v145_v19, 7  ;;  %v151_v22 = vand.u32 127, %v145_v19  ;;  %s289_s17 = sshll.u32 %s443_s16, 4  ;;  %s290_s17 = int_to_ptr.vmem [resolvable:$true] %s289_s17 }
  0x29   :  { %v299_v9 = vld [vmem:[%s522_s2] ss:$0 sm:$0xff]  ;;  %v442_v27 = vmov 1.0|1.0   ;;  %vm281_vm9 = vcmask 9216   ;;  %s407_s18 = scalar_lea.vmem %s290_s17, 32  ;;  %p412_p3 = scmp.lt.s32.totalorder %s290_s17, %s290_s17 }
  0x2a   :  { %340 = vmatpush3.bf16.msra.mxu0 %v339_v5  ;;  %v147_v21 = vadd.s32 8, %v146_v20  ;;  %v156_v23 = vand.u32 1, %v146_v20  ;;  %v148_v25 = vadd.s32 16, %v146_v20  ;;  %v149_v26 = vadd.s32 24, %v146_v20  ;;  %v143_v33 = vld [vmem:[%s523_s3] sm:$0x3]  ;;  %p408_p2 = scmp.ne.s32.totalorder %s290_s17, %s407_s18  ;;  %p413_p4 = scmp.lt.s32.totalorder %s407_s18, %s407_s18 }
  0x2b   :  { %341 = vmatprep.subr.bf16.mxu0 %v439_v0 }
  0x2c   :  { %v163_v24 = vand.u32 1, %v147_v21  ;;  %vm200_vm3 = vcmp.eq.s32.totalorder %v156_v23, %v151_v22  ;;  %v170_v28 = vand.u32 1, %v148_v25  ;;  %v177_v29 = vand.u32 1, %v149_v26  ;;  %p414_p5 = por %p413_p4, %p412_p3 }
  0x2e   :  { %343 = vmatpush3.bf16.msra.mxu0 %v342_v7  ;;  %vm201_vm4 = vcmp.eq.s32.totalorder %v163_v24, %v151_v22  ;;  %vm202_vm6 = vcmp.eq.s32.totalorder %v170_v28, %v151_v22  ;;  %vm203_vm7 = vcmp.eq.s32.totalorder %v177_v29, %v151_v22  ;;  %p415_p6 = pnand %p414_p5, %p408_p2 }
  0x2f   :  { %vm345_vm5 = vmpackc.low %vm201_vm4, %vm200_vm3 }
  0x30   :  { %346 = vmatpush3.bf16.msk.msra.mxu1 %vm345_vm5, %v442_v27  ;;  %vm348_vm8 = vmpackc.low %vm203_vm7, %vm202_vm6 }
  0x31   :  { %325 = vmatmul.mubr.msk.f32.vlgmr.msra.gmra.mrb[0].mxu0 %vm56_vm1, %v44_v8  ;;  %347 = vmatprep.subr.bf16.mxu1 %v439_v0 }
  0x34   :  { %349 = vmatpush3.bf16.msk.msra.mxu1 %vm348_vm8, %v442_v27 }
 0x104   :  { %v126_v10 = vpop.f32.mrb[0].mxu0 }
 0x105   :  { %v127_v11 = vadd.f32 %v299_v9, %v126_v10  ;;  %v326_v12 = vpop.f32.mrb[1].mxu0 }
 0x107   :  { %v131_v13 = vsel %vm130_vm2, %v127_v11, -inf }
 0x108   :  { %132 = vmax.xlane.f32.xlu0 %v131_v13 }
 0x195   :  { %v133_v14 = vpop.xlane.xlu0 %132 }
 0x196   :  { %v134_v15 = vsub.f32 %v127_v11, %v133_v14 }
 0x198   :  { %v135_v16 = vmul.f32 1.442695, %v134_v15 }
 0x19a   :  { %359 = vpow2.f32 %v135_v16 }
 0x1a4   :  { %v360_v17 = vpop.eup %359 }
 0x1a5   :  { %v137_v18 = vsel %vm130_vm2, %v360_v17, 0.0 }
 0x1a6   :  { %138 = vadd.xlane.f32.xlu0 %v137_v18 }
 0x233   :  { %v139_v30 = vpop.xlane.xlu0 %138 }
 0x234   :  { %361 = vrcp.f32 %v139_v30 }
 0x23e   :  { %v362_v31 = vpop.eup %361 }
 0x23f   :  { %v141_v32 = vmul.f32 2.0, %v362_v31 }
 0x241   :  { %v142_v34 = vmul.f32 %v360_v17, %v141_v32 }
 0x243   :  { %v144_v35 = vmul.f32 %v143_v33, %v142_v34 }
 0x245   :  { %336 = vmatmul.mubr.msk.f32.vlgmr.msra.gmra.mrb[0].mxu1 %vm56_vm1, %v144_v35 }
 0x318   :  { %v277_v36 = vpop.f32.mrb[0].mxu1 }
 0x319   :  { %v337_v37 = vpop.f32.mrb[1].mxu1  ;;  %282 = vst.msk [vmem:[#allocation7] sm:$0x3] %vm281_vm9, %v277_v36 }
 0x31a   :  { %418 = shalt.err (!%p415_p6)
}
 0x31b   :  { %s419_s20 = scalar_lea.hbm %s524_s4, 32 }
 0x31c   :  { %p420_p7 = scmp.ne.s32.totalorder %s524_s4, %s419_s20  ;;  %p423_p8 = scmp.lt.u32.totalorder %s419_s20, %s524_s4 }
 0x31e   :  { %p425_p9 = pnand %p423_p8, %p420_p7 }
 0x320   :  { %428 = shalt.err (!%p425_p9)
}
 0x321   :  { %292 = dma.vmem_to_hbm [thread:$0]  %s290_s17, 32, %s524_s4, [#allocation4]  }
 0x322   :  { %433 = dma.done.wait [#allocation4], 32  }
 0x323   :  { %434 = vsyncadd [#allocation4], 4294967264 }
 0x324   :  { %296 = vsyncpa [#allocation3], 1 }
 0x325   :  { %297 = vsyncpa [#allocation6], 1 }
 0x326   :  { %298 = vsyncpa [#allocation4], 1 }

</bundles_post_ra>
